<compile_context>
chip_gen: v7x
topology: tpu7x:2x2x1
jax: 0.10.0
libtpu: 0.0.40
codegen_flags: <defaults>
</compile_context>

<pallas_src>
import jax
import jax.numpy as jnp
from jax import lax
from jax.experimental import pallas as pl
from jax.experimental.pallas import tpu as pltpu

# ---------------- config (small, consistent with the module's forward) -----------------
BATCH = 2          # batch
NUM_PASSAGES = 8   # config['extractor']['numpassages']
MAXLEN = 32        # token sequence length per passage
VOCAB = 64         # synthetic vocab
HIDDEN = 32        # synthetic encoder width (stands in for BERT hidden size)
TOPK = 3           # config['topk']   (config['hidden'] == 0 branch)
LANE = 128         # lane-dense width
SUB = 8            # sublane pad for the output slab / aux tile


# ------------------------------- fused forward kernel ----------------------------------
def birch_fused_kernel(doc_ref, seg_ref, mask_ref, etw_ref, aux_ref,
                       bn1_ref, wc_ref, out_ref):
    # One grid step == one batch row (all of its passages).
    doc = doc_ref[0]                                     # (P, L) int32 token ids
    seg_i = seg_ref[0]                                   # (P, L) int32 segment ids {0,1}
    m_i = mask_ref[0]                                    # (P, L) int32 attention mask {0,1}
    P, L = doc.shape
    Vp, Hp = etw_ref.shape                               # padded (128, 128)

    m = m_i.astype(jnp.float32)
    # masked token ids: invalid positions -> -1 so they match no vocab id
    doc_m = jnp.where(m_i > 0, doc, -1)                  # (P, L) int32

    # --- fused embedding lookup as one-hot counts (no host-side gather) ----------------
    # 2-D lane iota broadcast against doc ids; bf16 intermediate (exact: counts <= L=32).
    vocab_iota = lax.broadcasted_iota(jnp.int32, (1, 1, Vp), 2)          # (1, 1, Vp)
    onehot = (doc_m[:, :, None] == vocab_iota).astype(jnp.bfloat16)      # (P, L, Vp)
    counts = jnp.sum(onehot, axis=1).astype(jnp.float32)                 # (P, Vp) exact

    msum = jnp.sum(m, axis=1, keepdims=True)                             # (P, 1)
    seg1 = jnp.sum(m * seg_i.astype(jnp.float32), axis=1, keepdims=True)
    seg0 = msum - seg1
    denom = jnp.maximum(msum, 1.0)

    # w_pool pre-folded into the tables: Etw = tok_emb@w_pool, e{0,1}w = seg_emb@w_pool.
    e0w = aux_ref[0:1, :]                                # (1, Hp)
    e1w = aux_ref[1:2, :]
    b_pool = aux_ref[2:3, :]
    w_nsp1 = aux_ref[3:4, :]

    pre = (jnp.dot(counts, etw_ref[...], preferred_element_type=jnp.float32)
           + seg1 * e1w + seg0 * e0w) / denom + b_pool                   # (P, Hp)
    h = jnp.tanh(pre)

    # NSP logit column 1 only: VPU multiply + lane reduce (no (H,2) MXU pass).
    scores = jnp.sum(h * w_nsp1, axis=-1, keepdims=True) + bn1_ref[0]    # (P, 1)

    # --- top-k (first-occurrence ties, like torch.topk) + linear combine ----------------
    col = lax.broadcasted_iota(jnp.int32, (P, 1), 0)
    running = scores
    acc = jnp.zeros((1, 1), jnp.float32)
    for i in range(TOPK):                                # static unroll, K tiny
        mx = jnp.max(running, axis=0, keepdims=True)     # i-th largest for this row
        acc = acc + mx * wc_ref[i]                       # scalar combine weight (SMEM)
        cand = jnp.where(running == mx, col, P)
        first = jnp.min(cand, axis=0, keepdims=True)     # mask exactly one occurrence
        running = jnp.where(col == first, -jnp.inf, running)

    # lane-dense, sublane-aligned output slab (unmasked vst); wrapper slices [:, 0, :1]
    out_ref[...] = jnp.broadcast_to(acc.reshape(1, 1, 1), (1, SUB, LANE))


# ------------------------- one-time parameter fold / padding ---------------------------
def fold_params(params):
    """Fold w_pool into the embedding tables and pad V/H to lane width.  Run ONCE."""
    V, H = params["tok_emb"].shape
    Vp = ((V + LANE - 1) // LANE) * LANE
    Hp = ((H + LANE - 1) // LANE) * LANE
    w_pool = params["w_pool"]
    etw = params["tok_emb"] @ w_pool                      # (V, H)
    e0w = params["seg_emb"][0] @ w_pool                   # (H,)
    e1w = params["seg_emb"][1] @ w_pool                   # (H,)
    b_pool = params["b_pool"][0]                          # (H,)
    w_nsp1 = params["w_nsp"][:, 1]                        # (H,)

    etw_p = jnp.zeros((Vp, Hp), jnp.float32).at[:V, :H].set(etw)
    aux = (jnp.zeros((SUB, Hp), jnp.float32)
           .at[0, :H].set(e0w)
           .at[1, :H].set(e1w)
           .at[2, :H].set(b_pool)
           .at[3, :H].set(w_nsp1))
    return {
        "etw": etw_p,                                     # (Vp, Hp)
        "aux": aux,                                       # (SUB, Hp)
        "b_nsp1": params["b_nsp"][0, 1].reshape(1),       # (1,)    -> SMEM
        "wc": params["w_combine"].reshape(TOPK),          # (TOPK,) -> SMEM
    }


def birch_forward(doc, seg, mask, folded):
    # doc/seg/mask stay in their original (B, P, L) int32 shapes; no wrapper-side casts.
    B, P, L = doc.shape
    Vp, Hp = folded["etw"].shape
    assert TOPK <= P, "combine assumes topk <= numpassages"

    out = pl.pallas_call(
        birch_fused_kernel,
        out_shape=jax.ShapeDtypeStruct((B, SUB, LANE), jnp.float32),
        grid=(B,),
        in_specs=[
            pl.BlockSpec((1, P, L), lambda b: (b, 0, 0)),        # doc ids (int32)
            pl.BlockSpec((1, P, L), lambda b: (b, 0, 0)),        # seg ids (int32)
            pl.BlockSpec((1, P, L), lambda b: (b, 0, 0)),        # mask (int32)
            pl.BlockSpec((Vp, Hp), lambda b: (0, 0)),            # tok_emb @ w_pool
            pl.BlockSpec((SUB, Hp), lambda b: (0, 0)),           # packed row constants
            pl.BlockSpec(memory_space=pltpu.MemorySpace.SMEM),   # b_nsp1 (1,)
            pl.BlockSpec(memory_space=pltpu.MemorySpace.SMEM),   # w_combine (TOPK,)
        ],
        out_specs=pl.BlockSpec((1, SUB, LANE), lambda b: (b, 0, 0)),
        compiler_params=pltpu.CompilerParams(dimension_semantics=("parallel",)),
    )(doc, seg, mask, folded["etw"], folded["aux"], folded["b_nsp1"], folded["wc"])

    return out[:, 0, :1]                                  # (batch, 1) doc score


# --------------------------- pure-JAX reference (for checking) -------------------------
def birch_forward_ref(doc, seg, mask, params):
    x = params["tok_emb"][doc] + params["seg_emb"][seg]              # (B, P, L, H)
    m = mask.astype(jnp.float32)
    msum = jnp.maximum(m.sum(-1, keepdims=True), 1.0)
    pooled = (x * m[..., None]).sum(-2) / msum                       # (B, P, H)
    h = jnp.tanh(pooled @ params["w_pool"] + params["b_pool"][0])
    logits = h @ params["w_nsp"] + params["b_nsp"][0]                # (B, P, 2)
    scores = logits[:, :, 1]
    topk_vals, _ = lax.top_k(scores, TOPK)                           # (B, K) sorted desc
    return topk_vals @ params["w_combine"].T                         # (B, 1)


# -------------------------------------- main -------------------------------------------
if __name__ == "__main__":
    key = jax.random.PRNGKey(0)
    k_doc, k_len, k_emb, k_seg_e, k_wp, k_bp, k_wn, k_bn = jax.random.split(key, 8)

    # token ids, segment ids, attention mask  (batch, numpassages, maxlen), all int32
    doc = jax.random.randint(k_doc, (BATCH, NUM_PASSAGES, MAXLEN), 0, VOCAB, dtype=jnp.int32)
    lengths = jax.random.randint(k_len, (BATCH, NUM_PASSAGES, 1), 8, MAXLEN + 1, dtype=jnp.int32)
    pos = jnp.arange(MAXLEN, dtype=jnp.int32)[None, None, :]
    mask = (pos < lengths).astype(jnp.int32)
    seg = ((pos >= (lengths // 2)) & (pos < lengths)).astype(jnp.int32)

    params = {
        "tok_emb": 0.1 * jax.random.normal(k_emb, (VOCAB, HIDDEN), jnp.float32),
        "seg_emb": 0.1 * jax.random.normal(k_seg_e, (2, HIDDEN), jnp.float32),
        "w_pool": 0.1 * jax.random.normal(k_wp, (HIDDEN, HIDDEN), jnp.float32),
        "b_pool": 0.1 * jax.random.normal(k_bp, (1, HIDDEN), jnp.float32),
        "w_nsp": 0.1 * jax.random.normal(k_wn, (HIDDEN, 2), jnp.float32),
        "b_nsp": 0.1 * jax.random.normal(k_bn, (1, 2), jnp.float32),
        # nn.Linear(topk, 1, bias=False) initialized to ones / topk  (hidden == 0 branch)
        "w_combine": jnp.ones((1, TOPK), jnp.float32) / TOPK,
    }

    folded = fold_params(params)                   # one-time weight fold + lane padding
    folded = jax.block_until_ready(folded)

    doc_score = birch_forward(doc, seg, mask, folded)
    doc_score = jax.block_until_ready(doc_score)
    assert doc_score.shape == (BATCH, 1)

    ref = birch_forward_ref(doc, seg, mask, params)
    assert jnp.allclose(doc_score, ref, rtol=1e-4, atol=1e-4), (doc_score, ref)

    print("KERNEL_OK")
</pallas_src>

<mosaic_0001>
module attributes {stable_mosaic.version = 11 : i64} {
  func.func @birch_fused_kernel(%arg0: i32, %arg1: memref<1x8x32xi32, #tpu.memory_space<vmem>>, %arg2: memref<1x8x32xi32, #tpu.memory_space<vmem>>, %arg3: memref<1x8x32xi32, #tpu.memory_space<vmem>>, %arg4: memref<128x128xf32, #tpu.memory_space<vmem>>, %arg5: memref<8x128xf32, #tpu.memory_space<vmem>>, %arg6: memref<1xf32, #tpu.memory_space<smem>>, %arg7: memref<3xf32, #tpu.memory_space<smem>>, %arg8: memref<1x8x128xf32, #tpu.memory_space<vmem>>) attributes {dimension_semantics = [#tpu.dimension_semantics<parallel>], iteration_bounds = array<i64: 2>, scalar_prefetch = 0 : i64, scratch_operands = 0 : i64, tpu.core_type = #tpu.core_type<tc>, window_params = [{transform_indices = @transform_0, window_bounds = array<i64: 1, 8, 32>}, {transform_indices = @transform_1, window_bounds = array<i64: 1, 8, 32>}, {transform_indices = @transform_2, window_bounds = array<i64: 1, 8, 32>}, {pipeline_mode = #tpu.pipeline_mode<synchronous>, transform_indices = @transform_3, window_bounds = array<i64: 128, 128>}, {pipeline_mode = #tpu.pipeline_mode<synchronous>, transform_indices = @transform_4, window_bounds = array<i64: 8, 128>}, {transform_indices = @transform_5, window_bounds = array<i64: 1>}, {transform_indices = @transform_6, window_bounds = array<i64: 3>}, {transform_indices = @transform_7, window_bounds = array<i64: 1, 8, 128>}]} {
    %c0 = arith.constant 0 : index
    %c0_0 = arith.constant 0 : index
    %c0_1 = arith.constant 0 : index
    %0 = vector.load %arg1[%c0, %c0_0, %c0_1] : memref<1x8x32xi32, #tpu.memory_space<vmem>>, vector<1x8x32xi32>
    %1 = vector.shape_cast %0 : vector<1x8x32xi32> to vector<8x32xi32>
    %c0_2 = arith.constant 0 : index
    %c0_3 = arith.constant 0 : index
    %c0_4 = arith.constant 0 : index
    %2 = vector.load %arg2[%c0_2, %c0_3, %c0_4] : memref<1x8x32xi32, #tpu.memory_space<vmem>>, vector<1x8x32xi32>
    %3 = vector.shape_cast %2 : vector<1x8x32xi32> to vector<8x32xi32>
    %c0_5 = arith.constant 0 : index
    %c0_6 = arith.constant 0 : index
    %c0_7 = arith.constant 0 : index
    %4 = vector.load %arg3[%c0_5, %c0_6, %c0_7] : memref<1x8x32xi32, #tpu.memory_space<vmem>>, vector<1x8x32xi32>
    %5 = vector.shape_cast %4 : vector<1x8x32xi32> to vector<8x32xi32>
    %6 = arith.sitofp %5 : vector<8x32xi32> to vector<8x32xf32>
    %c0_i32 = arith.constant 0 : i32
    %7 = vector.broadcast %c0_i32 : i32 to vector<8x32xi32>
    %8 = arith.cmpi sgt, %5, %7 : vector<8x32xi32>
    %c-1_i32 = arith.constant -1 : i32
    %9 = vector.broadcast %c-1_i32 : i32 to vector<8x32xi32>
    %10 = arith.select %8, %1, %9 : vector<8x32xi1>, vector<8x32xi32>
    %11 = tpu.iota {dimensions = array<i32: 2>} : vector<1x1x128xi32>
    %12 = vector.shape_cast %10 : vector<8x32xi32> to vector<8x32x1xi32>
    %13 = vector.broadcast %12 : vector<8x32x1xi32> to vector<8x32x128xi32>
    %14 = vector.broadcast %11 : vector<1x1x128xi32> to vector<8x32x128xi32>
    %15 = arith.cmpi eq, %13, %14 : vector<8x32x128xi32>
    %16 = arith.extui %15 : vector<8x32x128xi1> to vector<8x32x128xi32>
    %17 = arith.sitofp %16 : vector<8x32x128xi32> to vector<8x32x128xf32>
    %18 = arith.truncf %17 : vector<8x32x128xf32> to vector<8x32x128xbf16>
    %19 = arith.extf %18 : vector<8x32x128xbf16> to vector<8x32x128xf32>
    %cst = arith.constant dense<0.000000e+00> : vector<8x128xf32>
    %20 = vector.multi_reduction <add>, %19, %cst [1] : vector<8x32x128xf32> to vector<8x128xf32>
    %21 = arith.truncf %20 : vector<8x128xf32> to vector<8x128xbf16>
    %22 = arith.extf %21 : vector<8x128xbf16> to vector<8x128xf32>
    %cst_8 = arith.constant dense<0.000000e+00> : vector<8xf32>
    %23 = vector.multi_reduction <add>, %6, %cst_8 [1] : vector<8x32xf32> to vector<8xf32>
    %24 = vector.shape_cast %23 : vector<8xf32> to vector<8x1xf32>
    %25 = arith.sitofp %3 : vector<8x32xi32> to vector<8x32xf32>
    %26 = arith.mulf %6, %25 : vector<8x32xf32>
    %cst_9 = arith.constant dense<0.000000e+00> : vector<8xf32>
    %27 = vector.multi_reduction <add>, %26, %cst_9 [1] : vector<8x32xf32> to vector<8xf32>
    %28 = vector.shape_cast %27 : vector<8xf32> to vector<8x1xf32>
    %29 = arith.subf %24, %28 : vector<8x1xf32>
    %cst_10 = arith.constant 1.000000e+00 : f32
    %30 = vector.broadcast %cst_10 : f32 to vector<8x1xf32>
    %31 = arith.maximumf %24, %30 : vector<8x1xf32>
    %c0_11 = arith.constant 0 : index
    %c0_12 = arith.constant 0 : index
    %32 = vector.load %arg5[%c0_11, %c0_12] : memref<8x128xf32, #tpu.memory_space<vmem>>, vector<1x128xf32>
    %c1 = arith.constant 1 : index
    %c0_13 = arith.constant 0 : index
    %33 = vector.load %arg5[%c1, %c0_13] : memref<8x128xf32, #tpu.memory_space<vmem>>, vector<1x128xf32>
    %c2 = arith.constant 2 : index
    %c0_14 = arith.constant 0 : index
    %34 = vector.load %arg5[%c2, %c0_14] : memref<8x128xf32, #tpu.memory_space<vmem>>, vector<1x128xf32>
    %c3 = arith.constant 3 : index
    %c0_15 = arith.constant 0 : index
    %35 = vector.load %arg5[%c3, %c0_15] : memref<8x128xf32, #tpu.memory_space<vmem>>, vector<1x128xf32>
    %c0_16 = arith.constant 0 : index
    %c0_17 = arith.constant 0 : index
    %36 = vector.load %arg4[%c0_16, %c0_17] : memref<128x128xf32, #tpu.memory_space<vmem>>, vector<128x128xf32>
    %cst_18 = arith.constant dense<0.000000e+00> : vector<8x128xf32>
    %37 = tpu.matmul %22, %36, %cst_18 {dimension_numbers = #tpu.dot_dimension_numbers<[1], [0], [0], [1], [0, 0, 1, 1], [], []>} : vector<8x128xf32>, vector<128x128xf32>, vector<8x128xf32> -> vector<8x128xf32>
    %38 = vector.broadcast %28 : vector<8x1xf32> to vector<8x128xf32>
    %39 = vector.broadcast %33 : vector<1x128xf32> to vector<8x128xf32>
    %40 = arith.mulf %38, %39 : vector<8x128xf32>
    %41 = arith.addf %37, %40 : vector<8x128xf32>
    %42 = vector.broadcast %29 : vector<8x1xf32> to vector<8x128xf32>
    %43 = vector.broadcast %32 : vector<1x128xf32> to vector<8x128xf32>
    %44 = arith.mulf %42, %43 : vector<8x128xf32>
    %45 = arith.addf %41, %44 : vector<8x128xf32>
    %46 = vector.broadcast %31 : vector<8x1xf32> to vector<8x128xf32>
    %47 = arith.divf %45, %46 : vector<8x128xf32>
    %48 = vector.broadcast %34 : vector<1x128xf32> to vector<8x128xf32>
    %49 = arith.addf %47, %48 : vector<8x128xf32>
    %50 = math.tanh %49 : vector<8x128xf32>
    %51 = vector.broadcast %35 : vector<1x128xf32> to vector<8x128xf32>
    %52 = arith.mulf %50, %51 : vector<8x128xf32>
    %cst_19 = arith.constant dense<0.000000e+00> : vector<8xf32>
    %53 = vector.multi_reduction <add>, %52, %cst_19 [1] : vector<8x128xf32> to vector<8xf32>
    %54 = vector.shape_cast %53 : vector<8xf32> to vector<8x1xf32>
    %c0_20 = arith.constant 0 : index
    %55 = memref.load %arg6[%c0_20] : memref<1xf32, #tpu.memory_space<smem>>
    %56 = vector.broadcast %55 : f32 to vector<8x1xf32>
    %57 = arith.addf %54, %56 : vector<8x1xf32>
    %58 = tpu.iota {dimensions = array<i32: 0>} : vector<8x1xi32>
    %cst_21 = arith.constant 0.000000e+00 : f32
    %59 = vector.broadcast %cst_21 : f32 to vector<1x1xf32>
    %cst_22 = arith.constant dense<0xFF800000> : vector<1xf32>
    %60 = vector.multi_reduction <maximumf>, %57, %cst_22 [0] : vector<8x1xf32> to vector<1xf32>
    %61 = vector.shape_cast %60 : vector<1xf32> to vector<1x1xf32>
    %c0_23 = arith.constant 0 : index
    %62 = memref.load %arg7[%c0_23] : memref<3xf32, #tpu.memory_space<smem>>
    %63 = vector.broadcast %62 : f32 to vector<1x1xf32>
    %64 = arith.mulf %61, %63 : vector<1x1xf32>
    %65 = arith.addf %59, %64 : vector<1x1xf32>
    %66 = vector.broadcast %61 : vector<1x1xf32> to vector<8x1xf32>
    %67 = arith.cmpf oeq, %57, %66 : vector<8x1xf32>
    %c8_i32 = arith.constant 8 : i32
    %68 = vector.broadcast %c8_i32 : i32 to vector<8x1xi32>
    %69 = arith.select %67, %58, %68 : vector<8x1xi1>, vector<8x1xi32>
    %cst_24 = arith.constant dense<2147483647> : vector<1xi32>
    %70 = vector.multi_reduction <minsi>, %69, %cst_24 [0] : vector<8x1xi32> to vector<1xi32>
    %71 = vector.shape_cast %70 : vector<1xi32> to vector<1x1xi32>
    %72 = vector.broadcast %71 : vector<1x1xi32> to vector<8x1xi32>
    %73 = arith.cmpi eq, %58, %72 : vector<8x1xi32>
    %cst_25 = arith.constant 0xFF800000 : f32
    %74 = vector.broadcast %cst_25 : f32 to vector<8x1xf32>
    %75 = arith.select %73, %74, %57 : vector<8x1xi1>, vector<8x1xf32>
    %cst_26 = arith.constant dense<0xFF800000> : vector<1xf32>
    %76 = vector.multi_reduction <maximumf>, %75, %cst_26 [0] : vector<8x1xf32> to vector<1xf32>
    %77 = vector.shape_cast %76 : vector<1xf32> to vector<1x1xf32>
    %c1_27 = arith.constant 1 : index
    %78 = memref.load %arg7[%c1_27] : memref<3xf32, #tpu.memory_space<smem>>
    %79 = vector.broadcast %78 : f32 to vector<1x1xf32>
    %80 = arith.mulf %77, %79 : vector<1x1xf32>
    %81 = arith.addf %65, %80 : vector<1x1xf32>
    %82 = vector.broadcast %77 : vector<1x1xf32> to vector<8x1xf32>
    %83 = arith.cmpf oeq, %75, %82 : vector<8x1xf32>
    %c8_i32_28 = arith.constant 8 : i32
    %84 = vector.broadcast %c8_i32_28 : i32 to vector<8x1xi32>
    %85 = arith.select %83, %58, %84 : vector<8x1xi1>, vector<8x1xi32>
    %cst_29 = arith.constant dense<2147483647> : vector<1xi32>
    %86 = vector.multi_reduction <minsi>, %85, %cst_29 [0] : vector<8x1xi32> to vector<1xi32>
    %87 = vector.shape_cast %86 : vector<1xi32> to vector<1x1xi32>
    %88 = vector.broadcast %87 : vector<1x1xi32> to vector<8x1xi32>
    %89 = arith.cmpi eq, %58, %88 : vector<8x1xi32>
    %cst_30 = arith.constant 0xFF800000 : f32
    %90 = vector.broadcast %cst_30 : f32 to vector<8x1xf32>
    %91 = arith.select %89, %90, %75 : vector<8x1xi1>, vector<8x1xf32>
    %cst_31 = arith.constant dense<0xFF800000> : vector<1xf32>
    %92 = vector.multi_reduction <maximumf>, %91, %cst_31 [0] : vector<8x1xf32> to vector<1xf32>
    %93 = vector.shape_cast %92 : vector<1xf32> to vector<1x1xf32>
    %c2_32 = arith.constant 2 : index
    %94 = memref.load %arg7[%c2_32] : memref<3xf32, #tpu.memory_space<smem>>
    %95 = vector.broadcast %94 : f32 to vector<1x1xf32>
    %96 = arith.mulf %93, %95 : vector<1x1xf32>
    %97 = arith.addf %81, %96 : vector<1x1xf32>
    %98 = vector.shape_cast %97 : vector<1x1xf32> to vector<1x1x1xf32>
    %99 = vector.shape_cast %98 : vector<1x1x1xf32> to vector<1x1x1xf32>
    %100 = vector.broadcast %99 : vector<1x1x1xf32> to vector<1x8x128xf32>
    %c0_33 = arith.constant 0 : index
    %c0_34 = arith.constant 0 : index
    %c0_35 = arith.constant 0 : index
    %101 = vector.load %arg8[%c0_33, %c0_34, %c0_35] : memref<1x8x128xf32, #tpu.memory_space<vmem>>, vector<1x8x128xf32>
    tpu.vector_store %arg8[%c0_33, %c0_34, %c0_35], %100 {strides = array<i32>} : memref<1x8x128xf32, #tpu.memory_space<vmem>>, vector<1x8x128xf32>,
    return
  }
  func.func @transform_0(%arg0: i32) -> (i32, i32, i32) {
    %c0_i32 = arith.constant 0 : i32
    %c0_i32_0 = arith.constant 0 : i32
    %c0_i32_1 = arith.constant 0 : i32
    return %arg0, %c0_i32, %c0_i32_0 : i32, i32, i32
  }
  func.func @transform_1(%arg0: i32) -> (i32, i32, i32) {
    %c0_i32 = arith.constant 0 : i32
    %c0_i32_0 = arith.constant 0 : i32
    %c0_i32_1 = arith.constant 0 : i32
    return %arg0, %c0_i32, %c0_i32_0 : i32, i32, i32
  }
  func.func @transform_2(%arg0: i32) -> (i32, i32, i32) {
    %c0_i32 = arith.constant 0 : i32
    %c0_i32_0 = arith.constant 0 : i32
    %c0_i32_1 = arith.constant 0 : i32
    return %arg0, %c0_i32, %c0_i32_0 : i32, i32, i32
  }
  func.func @transform_3(%arg0: i32) -> (i32, i32) {
    %c0_i32 = arith.constant 0 : i32
    %c0_i32_0 = arith.constant 0 : i32
    %c0_i32_1 = arith.constant 0 : i32
    return %c0_i32, %c0_i32_0 : i32, i32
  }
  func.func @transform_4(%arg0: i32) -> (i32, i32) {
    %c0_i32 = arith.constant 0 : i32
    %c0_i32_0 = arith.constant 0 : i32
    %c0_i32_1 = arith.constant 0 : i32
    return %c0_i32, %c0_i32_0 : i32, i32
  }
  func.func @transform_5(%arg0: i32) -> i32 {
    %c0_i32 = arith.constant 0 : i32
    %c0_i32_0 = arith.constant 0 : i32
    return %c0_i32 : i32
  }
  func.func @transform_6(%arg0: i32) -> i32 {
    %c0_i32 = arith.constant 0 : i32
    %c0_i32_0 = arith.constant 0 : i32
    return %c0_i32 : i32
  }
  func.func @transform_7(%arg0: i32) -> (i32, i32, i32) {
    %c0_i32 = arith.constant 0 : i32
    %c0_i32_0 = arith.constant 0 : i32
    %c0_i32_1 = arith.constant 0 : i32
    return %arg0, %c0_i32, %c0_i32_0 : i32, i32, i32
  }
}

</mosaic_0001>

<bundles_post_ra>
// kernel: tpu_custom_call.1
= control target key start
LH: loop header
LB: loop body
LE: loop exit
PB: predicated region body
PF: predicated region fallthrough
CT: control target
= control target key end

     0   :  { %s2042_s0 = inlined_call_operand.hbm [shape: s32[2,8,32], index: 0, kind: input, shape index: {}]   ;;  %s2043_s1 = inlined_call_operand.hbm [shape: s32[2,8,32], index: 1, kind: input, shape index: {}]   ;;  %s2044_s2 = inlined_call_operand.hbm [shape: s32[2,8,32], index: 2, kind: input, shape index: {}]   ;;  %s2045_s3 = inlined_call_operand.hbm [shape: f32[128,128], index: 3, kind: input, shape index: {}]   ;;  %s2046_s4 = inlined_call_operand.vmem [shape: f32[8,128], index: 4, kind: input, shape index: {}]   ;;  %s2047_s5 = inlined_call_operand.<no memory space> [shape: f32[1], index: 5, kind: input, shape index: {}]   ;;  %s2048_s6 = inlined_call_operand.vmem [shape: f32[3], index: 6, kind: input, shape index: {}]   ;;  %s2049_s7 = inlined_call_operand.hbm [shape: f32[2,8,128], index: 7, kind: output, shape index: {}]  }
   0x1   :  { %2061 = sst [smem:[#allocation22_spill]] %s2043_s1 }
   0x2   :  { %2062 = sst [smem:[#allocation23_spill]] %s2048_s6 }
   0x3   :  { %12 = sst [smem:[#allocation2]] %s2047_s5 }
   0x4   :  { %13 = vsyncpa [#allocation4], 0 }
   0x5   :  { %15 = vsyncpa [#allocation4 + $0x1], 0 }
   0x6   :  { %16 = vsyncpa [#allocation8], 0 }
   0x7   :  { %18 = vsyncpa [#allocation8 + $0x1], 0 }
   0x8   :  { %19 = vsyncpa [#allocation11], 0 }
   0x9   :  { %20 = vsyncpa [#allocation6], 0 }
   0xa   :  { %21 = vsyncpa [#allocation5], 0 }
   0xb   :  { %23 = vsyncpa [#allocation5 + $0x1], 0  ;;  %s1637_s26 = smov 0   ;;  %s1639_s27 = smov 0  }
   0xc   :  { %s1641_s28 = smov 0   ;;  %s1643_s29 = smov 0  }
   0xd LB: > { %2063 = sst [smem:[#allocation19_spill]] %s1581_s29  ;;  %s1658_s5 = sadd.s32 1, %s1581_s29   ;;  %s1581_s29 = sphi %s1643_s29, %s2089_s29   ;;  %s1577_s28 = sphi %s1641_s28, %s2093_s28   ;;  %s1573_s27 = sphi %s1639_s27, %s2092_s27   ;;  %s1569_s26 = sphi %s1637_s26, %s2091_s26  }
   0xe   : > { %2064 = sst [smem:[#allocation20_spill]] %s1658_s5  ;;  %s36_s30 = sadd.s32 1, %s1577_s28 }
   0xf   : > { %s33_s8 = ssub.s32 %s1581_s29, %s1658_s5  ;;  %p2050_p0 = scmp.ne.s32.totalorder %s1577_s28, %s1573_s27 }
  0x10   : > { %p34_p1 = scmp.eq.s32.totalorder %s33_s8, 0  ;;  %p44_p2 = scmp.eq.s32.totalorder %s1581_s29, 0 }
  0x11   : > { %p1323_p4 = scmp.lt.s32.totalorder %s1581_s29, 2  ;;  %s2051_s10 = sand.u32 1, %s1577_s28  }
  0x12   : > { %s1669_s9 = scalar_select %p34_p1, %s1577_s28, %s36_s30  }
  0x13   : > { %p45_p5 = por %p44_p2, %p2050_p0  ;;  %s1677_s11 = sshll.u32 %s2051_s10, 3 }
  0x14   : > { %2065 = sst [smem:[#allocation21_spill]] %s1669_s9  ;;  %s1680_s12 = sshll.u32 %s1581_s29, 7 }
  0x15   : > { %p1682_p6 = pnand %p1323_p4, %p45_p5  ;;  %s283_s14 = sand.u32 1, %s1581_s29  }
  0x16   : > { %s2067_s1 = sld [smem:[#allocation22_spill]]  ;;  %s287_s18 = scalar_lea.vmem [#allocation7], %s1677_s11 }
  0x17   : > { %s2066_s13 = scalar_select %p1682_p6, 1, 0 }
  0x18   : > { %s294_s19 = sshll.u32 %s287_s18, 4  ;;  %s1696_s20 = scalar_lea.sflag [#allocation8], %s283_s14  ;;  %s1694_s19 = int_to_ptr.vmem [resolvable:$true] %s294_s19 }
  0x19   : > { %p1702_p8 = pneg %p1682_p6 }
  0x1c   : > { %s1691_s17 = scalar_lea.hbm %s2067_s1, %s1680_s12  ;;  %s1375_s25 = scalar_lea.hbm %s2067_s1, 256 }
  0x1d   : > { %s1370_s21 = scalar_lea.hbm %s1691_s17, 128  ;;  %p1376_p11 = scmp.lt.u32.totalorder %s1691_s17, %s2067_s1 }
  0x1e   : > { %p1371_p7 = scmp.ne.s32.totalorder %s1691_s17, %s1370_s21  ;;  %p1377_p12 = scmp.lt.u32.totalorder %s1375_s25, %s1370_s21 }
  0x1f   : > { %p1379_p1 = scmp.lt.u32.totalorder %s1370_s21, %s1691_s17 }
  0x20   : > { %p1373_p9 = pnand %p1702_p8, %p1371_p7  ;;  %p1378_p13 = por %p1377_p12, %p1376_p11 }
  0x22   : > { %p1374_p10 = pneg %p1373_p9  ;;  %p1380_p2 = por %p1379_p1, %p1378_p13 }
  0x24   : > { %p1381_p4 = pnand %p1380_p2, %p1374_p10 }
  0x26   : > { %1384 = shalt.err (!%p1381_p4)
}
  0x27   : > { %s1385_s14 = scalar_lea.vmem %s1694_s19, 128  ;;  %s1583_s15 = smov [#allocation7]  }
  0x28   : > { %p1386_p5 = scmp.ne.s32.totalorder %s1694_s19, %s1385_s14  ;;  %s1390_s16 = sshll.u32 %s1583_s15, 4  ;;  %s1391_s16 = int_to_ptr.vmem [resolvable:$false] %s1390_s16 }
  0x29   : > { %s1392_s18 = scalar_lea.vmem %s1391_s16, 256  ;;  %p1393_p3 = scmp.lt.s32.totalorder %s1694_s19, %s1391_s16 }
  0x2a   : > { %p1388_p7 = pnand %p1386_p5, %p1702_p8  ;;  %p1394_p0 = scmp.lt.s32.totalorder %s1392_s18, %s1385_s14 }
  0x2c   : > { %p1389_p9 = pneg %p1388_p7  ;;  %p1395_p11 = por %p1394_p0, %p1393_p3 }
  0x2e   : > { %p1396_p12 = pnand %p1395_p11, %p1389_p9 }
  0x30   : > { %1399 = shalt.err (!%p1396_p12)
}
  0x31   : > { %1313 = dma.hbm_to_vmem [thread:$0]  (!%p1682_p6), %s1691_s17, 128, %s1694_s19, %s1696_s20  }
  0x32   : > { %s1727_s21 = sadd.s32 4294967295, %s1581_s29   ;;  %s1148_s23 = sadd.s32 4294967294, %s1581_s29  }
  0x33   : > { %p49_p0 = scmp.ne.s32.totalorder %s1573_s27, %s1569_s26  ;;  %p2055_p3 = scmp.eq.s32.totalorder %s1727_s21, 0 }
  0x34   : > { %p209_p10 = scmp.eq.s32.totalorder %s1727_s21, 1  ;;  %p215_p13 = scmp.eq.s32.totalorder %s1148_s23, 1 }
  0x35   : > { %p1736_p1 = por %p2055_p3, %p49_p0  ;;  %p1149_p2 = scmp.ge.s32.totalorder %s1581_s29, 1 }
  0x36   : > { %p2070_p4 = scmp.ne.s32.totalorder %s1577_s28, %s1573_s27  ;;  %p1748_p7 = por %p215_p13, %p49_p0 }
  0x37   : > { %s2069_s24 = scalar_select %p1736_p1, 1, 0 }
  0x38   : > { %p1744_p5 = por %p209_p10, %p2070_p4  ;;  %p222_p9 = scmp.lt.s32.totalorder %s1581_s29, 3 }
  0x39   : > { %s2072_s19 = scalar_select %p1748_p7, 1, 0 }
  0x3a   : > { %s2071_s17 = scalar_select %p1744_p5, 1, 0 }
  0x3b   : > { %p1753_p11 = pnand %p1149_p2, %p222_p9  ;;  %s1584_s30 = smov [#allocation10]  }
  0x3c   : > { %s234_s8 = sshll.u32 %s1584_s30, 4  ;;  %s2074_s6 = sld [smem:[#allocation23_spill]]  ;;  %s1757_s8 = int_to_ptr.vmem [resolvable:$true] %s234_s8 }
  0x3d   : > { %s2073_s25 = scalar_select %p1753_p11, 1, 0 }
  0x3e   : > { %p1300_p12 = pneg %p1753_p11  ;;  %s1776_s30 = scalar_lea.hbm %s2042_s0, %s1680_s12 }
  0x3f   : > { %s269_s1 = scalar_lea.vmem [#allocation3], %s1677_s11  ;;  %s1400_s15 = scalar_lea.hbm %s2045_s3, 2048 }
  0x40   : > { %p1768_p0 = pnand %p1300_p12, %p2055_p3  ;;  %s1779_s9 = sshll.u32 %s269_s1, 4  ;;  %s277_s9 = int_to_ptr.vmem [resolvable:$true] %s1779_s9 }
  0x41   : > { %p1401_p10 = scmp.ne.s32.totalorder %s2045_s3, %s1400_s15  ;;  %p1407_p9 = scmp.lt.u32.totalorder %s1400_s15, %s2045_s3 }
  0x42   : > { %s254_s16 = sshll.u32 %s2074_s6, 4  ;;  %p1402_p13 = pneg %p1768_p0  ;;  %s1764_s16 = int_to_ptr.vmem [resolvable:$true] %s254_s16 }
  0x44   : > { %p1403_p2 = pnand %p1402_p13, %p1401_p10 }
  0x46   : > { %p1404_p4 = pneg %p1403_p2 }
  0x48   : > { %p1409_p12 = pnand %p1407_p9, %p1404_p4 }
  0x4a   : > { %1412 = shalt.err (!%p1409_p12)
}
  0x4b   : > { %s1413_s1 = scalar_lea.vmem %s1757_s8, 2048  ;;  %p1421_p1 = scmp.lt.s32.totalorder %s1757_s8, %s1757_s8 }
  0x4c   : > { %p1414_p3 = scmp.ne.s32.totalorder %s1757_s8, %s1413_s1  ;;  %p1422_p10 = scmp.lt.s32.totalorder %s1413_s1, %s1413_s1 }
  0x4e   : > { %p1416_p7 = pnand %p1414_p3, %p1402_p13  ;;  %p1423_p2 = por %p1422_p10, %p1421_p1 }
  0x50   : > { %p1417_p5 = pneg %p1416_p7 }
  0x52   : > { %p1424_p11 = pnand %p1423_p2, %p1417_p5 }
  0x54   : > { %1427 = shalt.err (!%p1424_p11)
}
  0x55   : > { %s1585_s6 = smov 128   ;;  %s1586_s29 = smov 8  }
  0x56   : > { %1303 = dma.hbm_to_vmem [thread:$0]  (!%p1768_p0), %s2045_s3, 2048, %s1757_s8, [#allocation11], %s1585_s6, %s1585_s6, %s1586_s29  }
  0x57   : > { %s1428_s15 = scalar_lea.vmem %s1764_s16, 16  ;;  %p1436_p7 = scmp.lt.s32.totalorder %s1764_s16, %s1764_s16 }
  0x58   : > { %p1429_p3 = scmp.ne.s32.totalorder %s1764_s16, %s1428_s15  ;;  %p1437_p11 = scmp.lt.s32.totalorder %s1428_s15, %s1428_s15 }
  0x5a   : > { %p1431_p1 = pnand %p1429_p3, %p1402_p13  ;;  %p1438_p4 = por %p1437_p11, %p1436_p7 }
  0x5c   : > { %p1432_p5 = pneg %p1431_p1 }
  0x5e   : > { %p1439_p9 = pnand %p1438_p4, %p1432_p5 }
  0x60   : > { %1442 = shalt.err (!%p1439_p9)
}
  0x61   : > { %s1587_s10 = smov [#allocation12]   ;;  %s2076_s8 = sand.u32 1, %s1577_s28  }
  0x62   : > { %1306 = dma.vmem_to_smem (!%p1768_p0), %s1764_s16, 16, %s1587_s10, [#allocation6]  }
  0x63   : > { %s266_s23 = scalar_lea.sflag [#allocation4], %s2076_s8  ;;  %s1443_s1 = scalar_lea.hbm %s1776_s30, 128 }
  0x64   : > { %p1444_p13 = scmp.ne.s32.totalorder %s1776_s30, %s1443_s1  ;;  %s1448_s18 = scalar_lea.hbm %s2042_s0, 256 }
  0x65   : > { %p1449_p2 = scmp.lt.u32.totalorder %s1776_s30, %s2042_s0  ;;  %p1450_p3 = scmp.lt.u32.totalorder %s1448_s18, %s1443_s1 }
  0x66   : > { %p1446_p12 = pnand %p1444_p13, %p1702_p8  ;;  %p1452_p5 = scmp.lt.u32.totalorder %s1443_s1, %s1776_s30 }
  0x67   : > { %p1451_p1 = por %p1450_p3, %p1449_p2 }
  0x68   : > { %p1447_p10 = pneg %p1446_p12 }
  0x69   : > { %p1453_p0 = por %p1452_p5, %p1451_p1 }
  0x6b   : > { %p1454_p7 = pnand %p1453_p0, %p1447_p10 }
  0x6d   : > { %1457 = shalt.err (!%p1454_p7)
}
  0x6e   : > { %s1458_s16 = scalar_lea.vmem %s277_s9, 128  ;;  %s1588_s15 = smov [#allocation3]  }
  0x6f   : > { %p1459_p11 = scmp.ne.s32.totalorder %s277_s9, %s1458_s16  ;;  %s1463_s10 = sshll.u32 %s1588_s15, 4  ;;  %s1464_s10 = int_to_ptr.vmem [resolvable:$false] %s1463_s10 }
  0x70   : > { %s1465_s8 = scalar_lea.vmem %s1464_s10, 256  ;;  %p1466_p13 = scmp.lt.s32.totalorder %s277_s9, %s1464_s10 }
  0x71   : > { %p1461_p4 = pnand %p1459_p11, %p1702_p8  ;;  %p1467_p12 = scmp.lt.s32.totalorder %s1465_s8, %s1458_s16 }
  0x73   : > { %p1462_p9 = pneg %p1461_p4  ;;  %p1468_p6 = por %p1467_p12, %p1466_p13 }
  0x75   : > { %p1469_p2 = pnand %p1468_p6, %p1462_p9 }
  0x77   : > { %1472 = shalt.err (!%p1469_p2)
}
  0x78   : > { %p2077_p3 = scmp.ne.s32.totalorder %s2066_s13, 0  ;;  %s1842_s29 = scalar_lea.hbm %s2044_s2, %s1680_s12 }
  0x79   : > { %s305_s18 = scalar_lea.vmem [#allocation9], %s1677_s11  ;;  %s1473_s14 = scalar_lea.hbm %s1842_s29, 128 }
  0x7a   : > { %1310 = dma.hbm_to_vmem [thread:$0]  (!%p2077_p3), %s1776_s30, 128, %s277_s9, %s266_s23  }
  0x7b   : > { %s312_s5 = sshll.u32 %s305_s18, 4  ;;  %p1474_p6 = scmp.ne.s32.totalorder %s1842_s29, %s1473_s14  ;;  %s313_s5 = int_to_ptr.vmem [resolvable:$true] %s312_s5 }
  0x7c   : > { %s1478_s9 = scalar_lea.hbm %s2044_s2, 256  ;;  %p1479_p5 = scmp.lt.u32.totalorder %s1842_s29, %s2044_s2 }
  0x7d   : > { %p1476_p10 = pnand %p1474_p6, %p1702_p8  ;;  %p1480_p0 = scmp.lt.u32.totalorder %s1478_s9, %s1473_s14 }
  0x7e   : > { %p1482_p11 = scmp.lt.u32.totalorder %s1473_s14, %s1842_s29 }
  0x7f   : > { %p1477_p1 = pneg %p1476_p10  ;;  %p1481_p7 = por %p1480_p0, %p1479_p5 }
  0x81   : > { %p1483_p4 = por %p1482_p11, %p1481_p7 }
  0x83   : > { %p1484_p9 = pnand %p1483_p4, %p1477_p1 }
  0x85   : > { %1487 = shalt.err (!%p1484_p9)
}
  0x86   : > { %s1488_s11 = scalar_lea.vmem %s313_s5, 128  ;;  %s1589_s12 = smov [#allocation9]  }
  0x87   : > { %p1489_p13 = scmp.ne.s32.totalorder %s313_s5, %s1488_s11  ;;  %s1493_s10 = sshll.u32 %s1589_s12, 4  ;;  %s1494_s10 = int_to_ptr.vmem [resolvable:$false] %s1493_s10 }
  0x88   : > { %s1495_s8 = scalar_lea.vmem %s1494_s10, 256  ;;  %p1496_p6 = scmp.lt.s32.totalorder %s313_s5, %s1494_s10 }
  0x89   : > { %p1491_p12 = pnand %p1489_p13, %p1702_p8  ;;  %p1497_p10 = scmp.lt.s32.totalorder %s1495_s8, %s1488_s11 }
  0x8b   : > { %p1492_p2 = pneg %p1491_p12  ;;  %p1498_p3 = por %p1497_p10, %p1496_p6 }
  0x8d   : > { %p1499_p0 = pnand %p1498_p3, %p1492_p2 }
  0x8f   : > { %1502 = shalt.err (!%p1499_p0)
}
  0x90   : > { %p2078_p5 = scmp.ne.s32.totalorder %s2066_s13, 0  ;;  %p2079_p1 = scmp.ne.s32.totalorder %s2073_s25, 0 }
  0x91   : > { %s1866_s22 = sand.u32 (!%p2079_p1), 1, %s1573_s27   ;;  %p2080_p8 = scmp.ne.s32.totalorder (!%p2079_p1), %s2069_s24, 0 }
  0x92   : > { %1316 = dma.hbm_to_vmem [thread:$0]  (!%p2078_p5), %s1842_s29, 128, %s313_s5, %s1696_s20  }
  0x93   : > { %321 = sbr.rel (%p2079_p1) target bundleno = 831 (0x33f), region = 48  ;;  %s1869_s1 = sshll.u32 (!%p2079_p1), %s1866_s22, 3 }
  0x94   : > { %s324_s6 = scalar_lea.sflag (!%p2079_p1), [#allocation4], %s1866_s22  ;;  %s327_s18 = scalar_lea.vmem (!%p2079_p1), [#allocation3], %s1869_s1 }
  0x9a   : > { %1548 = dma.done.wait (%p2080_p8), %s324_s6, 128  }
  0x9b   : > { %1550 = vsyncadd (%p2080_p8), %s324_s6, 4294967168  ;;  %s332_s13 = sand.u32 1, %s1727_s21   ;;  %s336_s25 = scalar_lea.vmem [#allocation7], %s1869_s1 }
  0x9c   : > { %s333_s20 = scalar_lea.sflag [#allocation8], %s332_s13 }
  0x9d   : > { %1552 = dma.done.wait (%p2080_p8), %s333_s20, 256  }
  0x9e   : > { %1554 = vsyncadd (%p2080_p8), %s333_s20, 4294967040  ;;  %s345_s29 = scalar_lea.vmem [#allocation9], %s1869_s1  ;;  %p2081_p3 = scmp.eq.s32.totalorder %s1727_s21, 0 }
  0xa0   : > { %1556 = dma.done.wait (%p2081_p3), [#allocation11], 2048   ;;  %p2082_p7 = pmov %p2081_p3 }
  0xa1   : > { %p2083_p11 = pmov %p2081_p3 }
  0xa2   : > { %1558 = vsyncadd (%p2082_p7), [#allocation11], 4294965248 }
  0xa3   : > { %1560 = dma.done.wait (%p2083_p11), [#allocation6], 16   ;;  %p2084_p4 = pmov %p2081_p3 }
  0xa5   : > { %1562 = vsyncadd (%p2084_p4), [#allocation6], 4294967280 }
  0xa6   : > { %358 = sfence }
  0xa7   : > { %v395_v0 = vld [vmem:[%s327_s18] sm:$0xff]  ;;  %v401_v2 = vlaneseq  ;;  %v802_v16 = vld [vmem:[#allocation10] sm:$0xff]  ;;  %v803_v17 = vld [vmem:[#allocation10 + $0x8] sm:$0xff]  ;;  %v1590_v21 = vmov 0.0|0.0   ;;  %vm1591_vm1 = vmmov 0   ;;  %v1592_v45 = vmov 0.0  }
  0xa8   : > { %v1892_v1 = vld [vmem:[%s345_s29] sm:$0xff]  ;;  %v1261_v18 = vpack.c.bf16 %v803_v17, %v802_v16  ;;  %1260 = vmatprep.subr.bf16.mxu0 %v1590_v21  ;;  %v806_v27 = vld [vmem:[#allocation10 + $0x20] sm:$0xff]  ;;  %v807_v28 = vld [vmem:[#allocation10 + $0x28] sm:$0xff]  ;;  %1257 = vmatprep.mubr.msk.f32.mxu0 %vm1591_vm1, %v1592_v45  ;;  %vm787_vm2 = vcmask 261120   ;;  %s937_s11 = sld [smem:[#allocation2]]  ;;  %s1202_s12 = sld [smem:[#allocation12 + $0x1]] }
  0xa9   : > { %vm399_vm0 = vcmp.gt.s32.totalorder %v1892_v1, 0  ;;  %v1896_v3 = vshrl.u32 %v401_v2, 7  ;;  %v804_v22 = vld [vmem:[#allocation10 + $0x10] sm:$0xff]  ;;  %v805_v23 = vld [vmem:[#allocation10 + $0x18] sm:$0xff]  ;;  %v1267_v29 = vpack.c.bf16 %v807_v28, %v806_v27  ;;  %v810_v34 = vld [vmem:[#allocation10 + $0x40] sm:$0xff]  ;;  %v398_v48 = vcvt.s32.f32 %v1892_v1  ;;  %s948_s10 = sld [smem:[#allocation12]] }
  0xaa   : > { %v400_v4 = vsel %vm399_vm0, %v395_v0, 4294967295  ;;  %1262 = vmatpush3.bf16.msra.mxu0 %v1261_v18  ;;  %v1264_v24 = vpack.c.bf16 %v805_v23, %v804_v22  ;;  %v808_v31 = vld [vmem:[#allocation10 + $0x30] sm:$0xff]  ;;  %v809_v32 = vld [vmem:[#allocation10 + $0x38] sm:$0xff]  ;;  %v811_v35 = vld [vmem:[#allocation10 + $0x48] sm:$0xff]  ;;  %v1911_v63 = vand.u32 127, %v401_v2  ;;  %s1203_s8 = sld [smem:[#allocation12 + $0x2]] }
  0xab   : > { %v424_v5 = vsub.s32 1, %v1896_v3  ;;  %v405_v6 = vsub.s32 0, %v1896_v3  ;;  %v443_v9 = vsub.s32 2, %v1896_v3  ;;  %v462_v11 = vsub.s32 3, %v1896_v3  ;;  %1263 = vmatprep.subr.bf16.mxu0 %v1590_v21  ;;  %v812_v37 = vld [vmem:[#allocation10 + $0x50] sm:$0xff]  ;;  %v813_v38 = vld [vmem:[#allocation10 + $0x58] sm:$0xff] }
  0xac   : > { %v481_v13 = vsub.s32 4, %v1896_v3  ;;  %v500_v15 = vsub.s32 5, %v1896_v3  ;;  %v519_v20 = vsub.s32 6, %v1896_v3  ;;  %v538_v26 = vsub.s32 7, %v1896_v3  ;;  %v814_v40 = vld [vmem:[#allocation10 + $0x60] sm:$0xff]  ;;  %v815_v41 = vld [vmem:[#allocation10 + $0x68] sm:$0xff] }
  0xad   : > { %v425_v7 = vrot.slane %v400_v4, %v424_v5  ;;  %v406_v8 = vrot.slane %v400_v4, %v405_v6  ;;  %v444_v10 = vrot.slane %v400_v4, %v443_v9  ;;  %v463_v12 = vrot.slane %v400_v4, %v462_v11  ;;  %v816_v43 = vld [vmem:[#allocation10 + $0x70] sm:$0xff]  ;;  %v817_v44 = vld [vmem:[#allocation10 + $0x78] sm:$0xff]  ;;  %v396_v47 = vld [vmem:[%s336_s25] sm:$0xff]  ;;  %s1205_s6 = sshll.u32 %s1727_s21, 7  ;;  %s394_s18 = scalar_lea.vmem [#allocation13], %s1869_s1 }
  0xae   : > { %v482_v14 = vrot.slane %v400_v4, %v481_v13  ;;  %v501_v19 = vrot.slane %v400_v4, %v500_v15  ;;  %v520_v25 = vrot.slane %v400_v4, %v519_v20  ;;  %1265 = vmatpush3.bf16.msra.mxu0 %v1264_v24  ;;  %v539_v30 = vrot.slane %v400_v4, %v538_v26  ;;  %s1013_s13 = sshll.u32 %s394_s18, 4  ;;  %s1998_s29 = scalar_lea.hbm %s2049_s7, %s1205_s6  ;;  %s2000_s13 = int_to_ptr.vmem [resolvable:$true] %s1013_s13 }
  0xaf   : > { %427 = vbcast.lane.b32.xlu1 %v425_v7, 256  ;;  %408 = vbcast.lane.b32.xlu0 %v406_v8, 256  ;;  %v1270_v33 = vpack.c.bf16 %v809_v32, %v808_v31  ;;  %v1273_v36 = vpack.c.bf16 %v811_v35, %v810_v34  ;;  %v1276_v39 = vpack.c.bf16 %v813_v38, %v812_v37  ;;  %v791_v49 = vcvt.s32.f32 %v396_v47  ;;  %s1000_s24 = scalar_lea.sflag [#allocation5], %s1866_s22  ;;  %s1503_s5 = scalar_lea.vmem %s2000_s13, 128 }
  0xb0   : > { %1266 = vmatprep.subr.bf16.mxu0 %v1590_v21  ;;  %v1279_v42 = vpack.c.bf16 %v815_v41, %v814_v40  ;;  %v1282_v46 = vpack.c.bf16 %v817_v44, %v816_v43  ;;  %v788_v50 = vsel %vm787_vm2, %v398_v48, 0.0  ;;  %p1504_p9 = scmp.ne.s32.totalorder %s2000_s13, %s1503_s5  ;;  %p2085_p13 = scmp.ne.s32.totalorder %s2071_s17, 0 }
  0xb1   : > { %v792_v51 = vmul.f32 %v791_v49, %v398_v48  ;;  %s1593_s21 = smov [#allocation13]  }
  0xb2   : > { %1268 = vmatpush3.bf16.msra.mxu0 %v1267_v29  ;;  %p1505_p12 = pnand %p1504_p9, %p2085_p13  ;;  %s1507_s1 = sshll.u32 %s1593_s21, 4  ;;  %s1508_s1 = int_to_ptr.vmem [resolvable:$false] %s1507_s1 }
  0xb3   : > { %431 = vbcast.lane.b32.xlu1 %v425_v7, 264  ;;  %412 = vbcast.lane.b32.xlu0 %v406_v8, 264  ;;  %v793_v52 = vsel %vm787_vm2, %v792_v51, 0.0  ;;  %s1509_s14 = scalar_lea.vmem %s1508_s1, 256  ;;  %p1510_p6 = scmp.lt.s32.totalorder %s2000_s13, %s1508_s1 }
  0xb4   : > { %1269 = vmatprep.subr.bf16.mxu0 %v1590_v21  ;;  %p1506_p2 = pneg %p1505_p12  ;;  %p1511_p10 = scmp.lt.s32.totalorder %s1509_s14, %s1503_s5 }
  0xb6   : > { %1271 = vmatpush3.bf16.msra.mxu0 %v1270_v33  ;;  %p1512_p0 = por %p1511_p10, %p1510_p6 }
  0xb7   : > { %450 = vbcast.lane.b32.xlu1 %v444_v10, 264  ;;  %446 = vbcast.lane.b32.xlu0 %v444_v10, 256 }
  0xb8   : > { %1272 = vmatprep.subr.bf16.mxu0 %v1590_v21  ;;  %p1513_p5 = pnand %p1512_p0, %p1506_p2 }
  0xba   : > { %1274 = vmatpush3.bf16.msra.mxu0 %v1273_v36 }
  0xbb   : > { %435 = vbcast.lane.b32.xlu1 %v425_v7, 272  ;;  %416 = vbcast.lane.b32.xlu0 %v406_v8, 272 }
  0xbc   : > { %1275 = vmatprep.subr.bf16.mxu0 %v1590_v21 }
  0xbe   : > { %1277 = vmatpush3.bf16.msra.mxu0 %v1276_v39 }
  0xbf   : > { %469 = vbcast.lane.b32.xlu1 %v463_v12, 264  ;;  %465 = vbcast.lane.b32.xlu0 %v463_v12, 256 }
  0xc0   : > { %1278 = vmatprep.subr.bf16.mxu0 %v1590_v21 }
  0xc2   : > { %1280 = vmatpush3.bf16.msra.mxu0 %v1279_v42 }
  0xc3   : > { %484 = vbcast.lane.b32.xlu1 %v482_v14, 256  ;;  %454 = vbcast.lane.b32.xlu0 %v444_v10, 272 }
  0xc4   : > { %1281 = vmatprep.subr.bf16.mxu0 %v1590_v21 }
  0xc6   : > { %1283 = vmatpush3.bf16.msra.mxu0 %v1282_v46 }
  0xc7   : > { %420 = vbcast.lane.b32.xlu1 %v406_v8, 280  ;;  %488 = vbcast.lane.b32.xlu0 %v482_v14, 264 }
  0xcb   : > { %473 = vbcast.lane.b32.xlu1 %v463_v12, 272  ;;  %439 = vbcast.lane.b32.xlu0 %v425_v7, 280 }
  0xcf   : > { %492 = vbcast.lane.b32.xlu1 %v482_v14, 272  ;;  %458 = vbcast.lane.b32.xlu0 %v444_v10, 280 }
  0xd3   : > { %496 = vbcast.lane.b32.xlu1 %v482_v14, 280  ;;  %477 = vbcast.lane.b32.xlu0 %v463_v12, 280 }
  0xd7   : > { %507 = vbcast.lane.b32.xlu1 %v501_v19, 264  ;;  %503 = vbcast.lane.b32.xlu0 %v501_v19, 256 }
  0xdb   : > { %526 = vbcast.lane.b32.xlu1 %v520_v25, 264  ;;  %522 = vbcast.lane.b32.xlu0 %v520_v25, 256 }
  0xdf   : > { %541 = vbcast.lane.b32.xlu1 %v539_v30, 256  ;;  %511 = vbcast.lane.b32.xlu0 %v501_v19, 272 }
  0xe3   : > { %530 = vbcast.lane.b32.xlu1 %v520_v25, 272  ;;  %545 = vbcast.lane.b32.xlu0 %v539_v30, 264 }
  0xe7   : > { %549 = vbcast.lane.b32.xlu1 %v539_v30, 272  ;;  %515 = vbcast.lane.b32.xlu0 %v501_v19, 280 }
  0xeb   : > { %553 = vbcast.lane.b32.xlu1 %v539_v30, 280  ;;  %534 = vbcast.lane.b32.xlu0 %v520_v25, 280 }
 0x10a   : > { %789 = vadd.xlane.f32.xlu0 %v788_v50 }
 0x10f   : > { %794 = vadd.xlane.f32.xlu1 %v793_v52 }
 0x121   : > { %v428_v53 = vpop.permute.xlu1 %427  ;;  %v409_v54 = vpop.permute.xlu0 %408 }
 0x122   : > { %vm559_vm5 = vcmp.eq.s32.totalorder %v428_v53, %v1911_v63  ;;  %vm555_vm7 = vcmp.eq.s32.totalorder %v409_v54, %v1911_v63 }
 0x123   : > { %v1170_v7 = vsel %vm559_vm5, 1.0, %v1592_v45  ;;  %v1166_v9 = vsel %vm555_vm7, 1.0, %v1592_v45 }
 0x125   : > { %v432_v55 = vpop.permute.xlu1 %431  ;;  %v413_v56 = vpop.permute.xlu0 %412 }
 0x126   : > { %vm560_vm3 = vcmp.eq.s32.totalorder %v432_v55, %v1911_v63  ;;  %vm556_vm4 = vcmp.eq.s32.totalorder %v413_v56, %v1911_v63 }
 0x127   : > { %v1171_v4 = vsel %vm560_vm3, 1.0, %v1592_v45  ;;  %v1167_v5 = vsel %vm556_vm4, 1.0, %v1592_v45 }
 0x128   : > { %v708_v10 = vadd.f32 %v1171_v4, %v1170_v7  ;;  %v699_v11 = vadd.f32 %v1167_v5, %v1166_v9 }
 0x129   : > { %v451_v57 = vpop.permute.xlu1 %450  ;;  %v447_v58 = vpop.permute.xlu0 %446 }
 0x12a   : > { %vm564_vm8 = vcmp.eq.s32.totalorder %v451_v57, %v1911_v63  ;;  %vm563_vm9 = vcmp.eq.s32.totalorder %v447_v58, %v1911_v63 }
 0x12b   : > { %v1175_v12 = vsel %vm564_vm8, 1.0, %v1592_v45  ;;  %v1174_v13 = vsel %vm563_vm9, 1.0, %v1592_v45 }
 0x12c   : > { %v717_v21 = vadd.f32 %v1175_v12, %v1174_v13 }
 0x12d   : > { %v436_v59 = vpop.permute.xlu1 %435  ;;  %v417_v60 = vpop.permute.xlu0 %416 }
 0x12e   : > { %vm561_vm6 = vcmp.eq.s32.totalorder %v436_v59, %v1911_v63  ;;  %vm557_vm10 = vcmp.eq.s32.totalorder %v417_v60, %v1911_v63 }
 0x12f   : > { %v1172_v8 = vsel %vm561_vm6, 1.0, %v1592_v45  ;;  %v1168_v15 = vsel %vm557_vm10, 1.0, %v1592_v45 }
 0x130   : > { %v709_v14 = vadd.f32 %v1172_v8, %v708_v10  ;;  %v700_v22 = vadd.f32 %v1168_v15, %v699_v11 }
 0x131   : > { %v470_v61 = vpop.permute.xlu1 %469  ;;  %v466_v62 = vpop.permute.xlu0 %465 }
 0x132   : > { %vm568_vm13 = vcmp.eq.s32.totalorder %v470_v61, %v1911_v63  ;;  %vm567_vm14 = vcmp.eq.s32.totalorder %v466_v62, %v1911_v63 }
 0x133   : > { %v1179_v24 = vsel %vm568_vm13, 1.0, %v1592_v45  ;;  %v1178_v25 = vsel %vm567_vm14, 1.0, %v1592_v45 }
 0x134   : > { %v726_v37 = vadd.f32 %v1179_v24, %v1178_v25 }
 0x135   : > { %v485_v0 = vpop.permute.xlu1 %484  ;;  %v455_v1 = vpop.permute.xlu0 %454 }
 0x136   : > { %vm565_vm11 = vcmp.eq.s32.totalorder %v455_v1, %v1911_v63  ;;  %vm571_vm15 = vcmp.eq.s32.totalorder %v485_v0, %v1911_v63 }
 0x137   : > { %v1176_v18 = vsel %vm565_vm11, 1.0, %v1592_v45  ;;  %v1182_v26 = vsel %vm571_vm15, 1.0, %v1592_v45 }
 0x138   : > { %v718_v30 = vadd.f32 %v1176_v18, %v717_v21 }
 0x139   : > { %v421_v2 = vpop.permute.xlu1 %420  ;;  %v489_v6 = vpop.permute.xlu0 %488 }
 0x13a   : > { %vm558_vm12 = vcmp.eq.s32.totalorder %v421_v2, %v1911_v63  ;;  %vm572_vm0 = vcmp.eq.s32.totalorder %v489_v6, %v1911_v63 }
 0x13b   : > { %v1169_v19 = vsel %vm558_vm12, 1.0, %v1592_v45  ;;  %v1183_v27 = vsel %vm572_vm0, 1.0, %v1592_v45 }
 0x13c   : > { %v701_v31 = vadd.f32 %v1169_v19, %v700_v22  ;;  %v735_v35 = vadd.f32 %v1183_v27, %v1182_v26 }
 0x13d   : > { %v474_v16 = vpop.permute.xlu1 %473  ;;  %v440_v17 = vpop.permute.xlu0 %439 }
 0x13e   : > { %vm562_vm1 = vcmp.eq.s32.totalorder %v440_v17, %v1911_v63  ;;  %vm569_vm4 = vcmp.eq.s32.totalorder %v474_v16, %v1911_v63  ;;  %v702_v43 = vrot.slane %v701_v31, 4 }
 0x13f   : > { %v1173_v20 = vsel %vm562_vm1, 1.0, %v1592_v45  ;;  %v1180_v40 = vsel %vm569_vm4, 1.0, %v1592_v45  ;;  %vm833_vm4 = vcmask 1042434  }
 0x140   : > { %v710_v23 = vadd.f32 %v1173_v20, %v709_v14  ;;  %v727_v48 = vadd.f32 %v1180_v40, %v726_v37  ;;  %v703_v53 = vadd.f32 %v702_v43, %v701_v31 }
 0x141   : > { %v493_v28 = vpop.permute.xlu1 %492  ;;  %v459_v29 = vpop.permute.xlu0 %458 }
 0x142   : > { %vm573_vm2 = vcmp.eq.s32.totalorder %v493_v28, %v1911_v63  ;;  %vm566_vm3 = vcmp.eq.s32.totalorder %v459_v29, %v1911_v63  ;;  %v711_v32 = vrot.slane %v710_v23, 4  ;;  %v704_v61 = vrot.slane %v703_v53, 2 }
 0x143   : > { %v1184_v33 = vsel %vm573_vm2, 1.0, %v1592_v45  ;;  %v1177_v34 = vsel %vm566_vm3, 1.0, %v1592_v45  ;;  %vm831_vm3 = vcmask 1041409  }
 0x144   : > { %v719_v36 = vadd.f32 %v1177_v34, %v718_v30  ;;  %v736_v41 = vadd.f32 %v1184_v33, %v735_v35  ;;  %v712_v44 = vadd.f32 %v711_v32, %v710_v23  ;;  %v705_v7 = vadd.f32 %v704_v61, %v703_v53 }
 0x145   : > { %v497_v38 = vpop.permute.xlu1 %496  ;;  %v478_v39 = vpop.permute.xlu0 %477 }
 0x146   : > { %v720_v42 = vrot.slane %v719_v36, 4  ;;  %vm574_vm5 = vcmp.eq.s32.totalorder %v497_v38, %v1911_v63  ;;  %vm570_vm6 = vcmp.eq.s32.totalorder %v478_v39, %v1911_v63  ;;  %v713_v54 = vrot.slane %v712_v44, 2 }
 0x147   : > { %v1185_v46 = vsel %vm574_vm5, 1.0, %v1592_v45  ;;  %v1181_v50 = vsel %vm570_vm6, 1.0, %v1592_v45  ;;  %v706_v16 = vrot.slane %v705_v7, 1  ;;  %vm835_vm5 = vcmask 1043459  }
 0x148   : > { %v737_v47 = vadd.f32 %v1185_v46, %v736_v41  ;;  %v721_v49 = vadd.f32 %v720_v42, %v719_v36  ;;  %v728_v55 = vadd.f32 %v1181_v50, %v727_v48  ;;  %v714_v62 = vadd.f32 %v713_v54, %v712_v44 }
 0x149   : > { %v508_v51 = vpop.permute.xlu1 %507  ;;  %v504_v52 = vpop.permute.xlu0 %503  ;;  %v707_v37 = vadd.f32 %v706_v16, %v705_v7  ;;  %vm837_vm6 = vcmask 1044484  }
 0x14a   : > { %v738_v56 = vrot.slane %v737_v47, 4  ;;  %v722_v57 = vrot.slane %v721_v49, 2  ;;  %v729_v58 = vrot.slane %v728_v55, 4  ;;  %vm576_vm7 = vcmp.eq.s32.totalorder %v508_v51, %v1911_v63 }
 0x14b   : > { %vm575_vm8 = vcmp.eq.s32.totalorder %v504_v52, %v1911_v63  ;;  %v715_v8 = vrot.slane %v714_v62, 1  ;;  %v1187_v10 = vsel %vm576_vm7, 1.0, %v1592_v45  ;;  %v771_v53 = vpack.c.bf16 %v707_v37, %v707_v37 }
 0x14c   : > { %v730_v0 = vadd.f32 %v729_v58, %v728_v55  ;;  %v739_v1 = vadd.f32 %v738_v56, %v737_v47  ;;  %v723_v4 = vadd.f32 %v722_v57, %v721_v49  ;;  %v1186_v11 = vsel %vm575_vm8, 1.0, %v1592_v45 }
 0x14d   : > { %v527_v59 = vpop.permute.xlu1 %526  ;;  %v523_v60 = vpop.permute.xlu0 %522  ;;  %v744_v17 = vadd.f32 %v1187_v10, %v1186_v11  ;;  %v716_v22 = vadd.f32 %v715_v8, %v714_v62  ;;  %vm839_vm7 = vcmask 1045509   ;;  %vm841_vm8 = vcmask 1046534  }
 0x14e   : > { %v731_v5 = vrot.slane %v730_v0, 2  ;;  %v740_v9 = vrot.slane %v739_v1, 2  ;;  %v724_v12 = vrot.slane %v723_v4, 1  ;;  %vm580_vm10 = vcmp.eq.s32.totalorder %v527_v59, %v1911_v63 }
 0x14f   : > { %vm579_vm11 = vcmp.eq.s32.totalorder %v523_v60, %v1911_v63  ;;  %v1191_v20 = vsel %vm580_vm10, 1.0, %v1592_v45  ;;  %v772_v44 = vpack.c.bf16 %v716_v22, %v716_v22  ;;  %v1198_v22 = vld [vmem:[%s2046_s4 + $0x1] ss:$0 sm:$0xff] }
 0x150   : > { %v732_v13 = vadd.f32 %v731_v5, %v730_v0  ;;  %v741_v19 = vadd.f32 %v740_v9, %v739_v1  ;;  %v1190_v21 = vsel %vm579_vm11, 1.0, %v1592_v45  ;;  %v725_v23 = vadd.f32 %v724_v12, %v723_v4 }
 0x151   : > { %v542_v2 = vpop.permute.xlu1 %541  ;;  %v512_v6 = vpop.permute.xlu0 %511  ;;  %v753_v30 = vadd.f32 %v1191_v20, %v1190_v21  ;;  %v780_v58 = vunpack.c.l.bf16 %v772_v44  ;;  %v779_v0 = vunpack.c.l.bf16 %v771_v53 }
 0x152   : > { %vm577_vm9 = vcmp.eq.s32.totalorder %v512_v6, %v1911_v63  ;;  %vm583_vm14 = vcmp.eq.s32.totalorder %v542_v2, %v1911_v63  ;;  %v733_v24 = vrot.slane %v732_v13, 1  ;;  %v742_v34 = vrot.slane %v741_v19, 1 }
 0x153   : > { %v1188_v18 = vsel %vm577_vm9, 1.0, %v1592_v45  ;;  %v1194_v31 = vsel %vm583_vm14, 1.0, %v1592_v45  ;;  %v773_v46 = vpack.c.bf16 %v725_v23, %v725_v23  ;;  %v832_v2 = vsel %vm831_vm3, %v780_v58, %v779_v0 }
 0x154   : > { %v745_v28 = vadd.f32 %v1188_v18, %v744_v17  ;;  %v734_v38 = vadd.f32 %v733_v24, %v732_v13  ;;  %v743_v49 = vadd.f32 %v742_v34, %v741_v19  ;;  %vm843_vm9 = vcmask 1047559  }
 0x155   : > { %v531_v14 = vpop.permute.xlu1 %530  ;;  %v546_v15 = vpop.permute.xlu0 %545  ;;  %v781_v59 = vunpack.c.l.bf16 %v773_v46 }
 0x156   : > { %vm584_vm12 = vcmp.eq.s32.totalorder %v546_v15, %v1911_v63  ;;  %vm581_vm13 = vcmp.eq.s32.totalorder %v531_v14, %v1911_v63  ;;  %v774_v54 = vpack.c.bf16 %v734_v38, %v734_v38  ;;  %v775_v60 = vpack.c.bf16 %v743_v49, %v743_v49 }
 0x157   : > { %v1195_v25 = vsel %vm584_vm12, 1.0, %v1592_v45  ;;  %v1192_v29 = vsel %vm581_vm13, 1.0, %v1592_v45  ;;  %v834_v9 = vsel %vm833_vm4, %v781_v59, %v832_v2 }
 0x158   : > { %v762_v35 = vadd.f32 %v1195_v25, %v1194_v31  ;;  %v754_v39 = vadd.f32 %v1192_v29, %v753_v30  ;;  %v782_v1 = vunpack.c.l.bf16 %v774_v54  ;;  %v783_v6 = vunpack.c.l.bf16 %v775_v60 }
 0x159   : > { %v550_v26 = vpop.permute.xlu1 %549  ;;  %v516_v27 = vpop.permute.xlu0 %515 }
 0x15a   : > { %vm585_vm15 = vcmp.eq.s32.totalorder %v550_v26, %v1911_v63  ;;  %vm578_vm0 = vcmp.eq.s32.totalorder %v516_v27, %v1911_v63  ;;  %v836_v11 = vsel %vm835_vm5, %v782_v1, %v834_v9  ;;  %v1199_v26 = vld [vmem:[%s2046_s4] ss:$0 sm:$0xff] }
 0x15b   : > { %v1196_v32 = vsel %vm585_vm15, 1.0, %v1592_v45  ;;  %v1189_v33 = vsel %vm578_vm0, 1.0, %v1592_v45  ;;  %v838_v16 = vsel %vm837_vm6, %v783_v6, %v836_v11 }
 0x15c   : > { %v746_v36 = vadd.f32 %v1189_v33, %v745_v28  ;;  %v763_v42 = vadd.f32 %v1196_v32, %v762_v35  ;;  %v1200_v33 = vld [vmem:[%s2046_s4 + $0x2] ss:$0 sm:$0xff] }
 0x15d   : > { %v554_v40 = vpop.permute.xlu1 %553  ;;  %v535_v41 = vpop.permute.xlu0 %534 }
 0x15e   : > { %v747_v43 = vrot.slane %v746_v36, 4  ;;  %vm586_vm1 = vcmp.eq.s32.totalorder %v554_v40, %v1911_v63  ;;  %vm582_vm2 = vcmp.eq.s32.totalorder %v535_v41, %v1911_v63 }
 0x15f   : > { %v1197_v47 = vsel %vm586_vm1, 1.0, %v1592_v45  ;;  %v1193_v48 = vsel %vm582_vm2, 1.0, %v1592_v45 }
 0x160   : > { %v748_v50 = vadd.f32 %v747_v43, %v746_v36  ;;  %v764_v51 = vadd.f32 %v1197_v47, %v763_v42  ;;  %v755_v52 = vadd.f32 %v1193_v48, %v754_v39  ;;  %v1201_v36 = vld [vmem:[%s2046_s4 + $0x3] ss:$0 sm:$0xff]  ;;  %v938_v39 = vstv %s937_s11 }
 0x162   : > { %v749_v55 = vrot.slane %v748_v50, 2  ;;  %v765_v56 = vrot.slane %v764_v51, 4  ;;  %v756_v57 = vrot.slane %v755_v52, 4 }
 0x164   : > { %v750_v63 = vadd.f32 %v749_v55, %v748_v50  ;;  %v766_v61 = vadd.f32 %v765_v56, %v764_v51  ;;  %v757_v62 = vadd.f32 %v756_v57, %v755_v52 }
 0x166   : > { %v751_v45 = vrot.slane %v750_v63, 1  ;;  %v767_v4 = vrot.slane %v766_v61, 2  ;;  %v758_v5 = vrot.slane %v757_v62, 2 }
 0x168   : > { %v768_v7 = vadd.f32 %v767_v4, %v766_v61  ;;  %v759_v8 = vadd.f32 %v758_v5, %v757_v62  ;;  %v752_v10 = vadd.f32 %v751_v45, %v750_v63 }
 0x16a   : > { %v760_v12 = vrot.slane %v759_v8, 1  ;;  %v769_v13 = vrot.slane %v768_v7, 1  ;;  %v840_v17 = vsel %vm839_vm7, %v752_v10, %v838_v16  ;;  %v972_v10 = vstv %s1202_s12 }
 0x16c   : > { %v761_v14 = vadd.f32 %v760_v12, %v759_v8  ;;  %v770_v15 = vadd.f32 %v769_v13, %v768_v7  ;;  %v949_v12 = vstv %s948_s10 }
 0x16e   : > { %v842_v18 = vsel %vm841_vm8, %v761_v14, %v840_v17 }
 0x16f   : > { %v844_v19 = vsel %vm843_vm9, %v770_v15, %v842_v18  ;;  %v995_v15 = vstv %s1203_s8 }
 0x170   : > { %1258 = vmatmul.mubr.f32.vlgmr.msra.gmra.mrb[0].mxu0 %v844_v19 }
 0x197   : > { %v790_v20 = vpop.xlane.xlu0 %789 }
 0x198   : > { %v797_v21 = vmax.f32 %v790_v20, 1.0 }
 0x19a   : > { %1366 = vrcp.f32 %v797_v21 }
 0x19c   : > { %v795_v23 = vpop.xlane.xlu1 %794 }
 0x19d   : > { %v822_v24 = vmul.f32 %v1198_v22, %v795_v23  ;;  %v796_v25 = vsub.f32 %v790_v20, %v795_v23 }
 0x19f   : > { %v920_v28 = vmul.f32 %v1199_v26, %v796_v25 }
 0x1a4   : > { %v1367_v31 = vpop.eup %1366 }
 0x243   : > { %v912_v27 = vpop.f32.mrb[0].mxu0 }
 0x244   : > { %v913_v29 = vadd.f32 %v912_v27, %v822_v24  ;;  %v1259_v30 = vpop.f32.mrb[1].mxu0 }
 0x246   : > { %v921_v32 = vadd.f32 %v920_v28, %v913_v29 }
 0x248   : > { %v923_v34 = vmul.f32 %v1367_v31, %v921_v32 }
 0x24a   : > { %v928_v35 = vadd.f32 %v1200_v33, %v923_v34 }
 0x24c   : > { %1368 = vtanh.f32 %v928_v35 }
 0x256   : > { %v1369_v37 = vpop.eup %1368 }
 0x257   : > { %v934_v38 = vmul.f32 %v1369_v37, %v1201_v36 }
 0x259   : > { %935 = vadd.xlane.f32.xlu0 %v934_v38 }
 0x2e6   : > { %v936_v40 = vpop.xlane.xlu0 %935 }
 0x2e7   : > { %v939_v41 = vadd.f32 %v938_v39, %v936_v40 }
 0x2e9   : > { %v942_v42 = vrot.slane %v939_v41, 4 }
 0x2eb   : > { %v943_v43 = vmax.f32 %v939_v41, %v942_v42 }
 0x2ed   : > { %v944_v44 = vrot.slane %v943_v43, 2 }
 0x2ef   : > { %v945_v46 = vmax.f32 %v943_v43, %v944_v44 }
 0x2f1   : > { %v946_v47 = vrot.slane %v945_v46, 1 }
 0x2f3   : > { %v947_v48 = vmax.f32 %v945_v46, %v946_v47 }
 0x2f5   : > { %vm952_vm10 = vcmp.eq.f32.partialorder %v939_v41, %v947_v48  ;;  %v950_v16 = vmul.f32 %v949_v12, %v947_v48 }
 0x2f6   : > { %v953_v49 = vsel %vm952_vm10, %v1896_v3, 8 }
 0x2f7   : > { %v954_v50 = vrot.slane %v953_v49, 4 }
 0x2f9   : > { %vm955_vm11 = vcmp.lt.s32.totalorder %v953_v49, %v954_v50 }
 0x2fa   : > { %v956_v51 = vsel %vm955_vm11, %v953_v49, %v954_v50 }
 0x2fb   : > { %v957_v52 = vrot.slane %v956_v51, 2 }
 0x2fd   : > { %vm958_vm12 = vcmp.lt.s32.totalorder %v956_v51, %v957_v52 }
 0x2fe   : > { %v959_v53 = vsel %vm958_vm12, %v956_v51, %v957_v52 }
 0x2ff   : > { %v960_v54 = vrot.slane %v959_v53, 1 }
 0x301   : > { %vm961_vm13 = vcmp.lt.s32.totalorder %v959_v53, %v960_v54 }
 0x302   : > { %v962_v55 = vsel %vm961_vm13, %v959_v53, %v960_v54 }
 0x303   : > { %vm963_vm14 = vcmp.eq.s32.totalorder %v1896_v3, %v962_v55 }
 0x304   : > { %v964_v56 = vsel %vm963_vm14, -inf, %v939_v41 }
 0x305   : > { %v965_v57 = vrot.slane %v964_v56, 4 }
 0x307   : > { %v966_v58 = vmax.f32 %v964_v56, %v965_v57 }
 0x309   : > { %v967_v59 = vrot.slane %v966_v58, 2 }
 0x30b   : > { %v968_v60 = vmax.f32 %v966_v58, %v967_v59 }
 0x30d   : > { %v969_v63 = vrot.slane %v968_v60, 1 }
 0x30f   : > { %v970_v61 = vmax.f32 %v968_v60, %v969_v63 }
 0x311   : > { %vm975_vm15 = vcmp.eq.f32.partialorder %v964_v56, %v970_v61  ;;  %v973_v13 = vmul.f32 %v972_v10, %v970_v61 }
 0x312   : > { %v976_v62 = vsel %vm975_vm15, %v1896_v3, 8 }
 0x313   : > { %v977_v0 = vrot.slane %v976_v62, 4 }
 0x315   : > { %vm978_vm0 = vcmp.lt.s32.totalorder %v976_v62, %v977_v0 }
 0x316   : > { %v979_v1 = vsel %vm978_vm0, %v976_v62, %v977_v0 }
 0x317   : > { %v980_v45 = vrot.slane %v979_v1, 2 }
 0x319   : > { %vm981_vm1 = vcmp.lt.s32.totalorder %v979_v1, %v980_v45 }
 0x31a   : > { %v982_v4 = vsel %vm981_vm1, %v979_v1, %v980_v45 }
 0x31b   : > { %v983_v5 = vrot.slane %v982_v4, 1 }
 0x31d   : > { %vm984_vm2 = vcmp.lt.s32.totalorder %v982_v4, %v983_v5 }
 0x31e   : > { %v985_v2 = vsel %vm984_vm2, %v982_v4, %v983_v5 }
 0x31f   : > { %vm986_vm3 = vcmp.eq.s32.totalorder %v1896_v3, %v985_v2  ;;  %v974_v3 = vadd.f32 %v973_v13, %v950_v16 }
 0x320   : > { %v987_v6 = vsel %vm986_vm3, -inf, %v964_v56 }
 0x321   : > { %v988_v7 = vrot.slane %v987_v6, 4 }
 0x323   : > { %v989_v8 = vmax.f32 %v987_v6, %v988_v7 }
 0x325   : > { %v990_v9 = vrot.slane %v989_v8, 2 }
 0x327   : > { %v991_v11 = vmax.f32 %v989_v8, %v990_v9 }
 0x329   : > { %v992_v14 = vrot.slane %v991_v11, 1 }
 0x32b   : > { %v993_v17 = vmax.f32 %v991_v11, %v992_v14 }
 0x32d   : > { %v996_v18 = vmul.f32 %v995_v15, %v993_v17 }
 0x32f   : > { %v997_v19 = vadd.f32 %v996_v18, %v974_v3 }
 0x331   : > { %998 = vst [vmem:[%s394_s18] sm:$0xff] %v997_v19 }
 0x332   : > { %1516 = shalt.err (!%p1513_p5)
}
 0x333   : > { %s1517_s22 = scalar_lea.hbm %s1998_s29, 128  ;;  %s1521_s9 = scalar_lea.hbm %s2049_s7, 256 }
 0x334   : > { %p1518_p1 = scmp.ne.s32.totalorder %s1998_s29, %s1517_s22  ;;  %p1522_p7 = scmp.lt.u32.totalorder %s1998_s29, %s2049_s7 }
 0x335   : > { %p1523_p11 = scmp.lt.u32.totalorder %s1521_s9, %s1517_s22  ;;  %p1525_p9 = scmp.lt.u32.totalorder %s1517_s22, %s1998_s29 }
 0x336   : > { %p1519_p8 = pnand %p1518_p1, %p2085_p13 }
 0x337   : > { %p1524_p4 = por %p1523_p11, %p1522_p7 }
 0x338   : > { %p1520_p3 = pneg %p1519_p8 }
 0x339   : > { %p1526_p12 = por %p1525_p9, %p1524_p4 }
 0x33b   : > { %p1527_p2 = pnand %p1526_p12, %p1520_p3 }
 0x33d   : > { %1530 = shalt.err (!%p1527_p2)
}
 0x33e   : > { %1298 = dma.vmem_to_hbm [thread:$0]  (%p2085_p13), %s2000_s13, 128, %s1998_s29, %s1000_s24  }
 0x33f PF: > { %s2086_s11 = sld [smem:[#allocation19_spill]]  ;;  %s1025_s12 = sand.u32 1, %s1569_s26  }
 0x340   : > { %p2087_p6 = scmp.ne.s32.totalorder %s2072_s19, 0  ;;  %s1026_s10 = scalar_lea.sflag [#allocation5], %s1025_s12 }
 0x345   : > { %p2088_p10 = scmp.ge.s32.totalorder %s2086_s11, 2 }
 0x347   : > { %p1318_p0 = pnand %p2088_p10, %p2087_p6 }
 0x349   : > { %1564 = dma.done.wait (!%p1318_p0), %s1026_s10, 128  }
 0x34a   : > { %1566 = vsyncadd (!%p1318_p0), %s1026_s10, 4294967168  ;;  %s2089_s29 = sld [smem:[#allocation20_spill]]  ;;  %s2090_s8 = sld [smem:[#allocation21_spill]] }
 0x34b   : > { %s2091_s26 = smov %s1573_s27  ;;  %s2092_s27 = smov %s1577_s28 }
 0x350   : > { %p26_p5 = scmp.ge.s32.totalorder %s2089_s29, 4   ;;  %s2093_s28 = smov %s2090_s8 }
 0x352   :  { %28 = sbr.rel (!%p26_p5) target bundleno = 13 (0xd), region = 126 }
 0x359   :  { %1031 = vsyncpa [#allocation4], 1 }
 0x35a   :  { %1033 = vsyncpa [#allocation4 + $0x1], 1 }
 0x35b   :  { %1034 = vsyncpa [#allocation8], 1 }
 0x35c   :  { %1036 = vsyncpa [#allocation8 + $0x1], 1 }
 0x35d   :  { %1037 = vsyncpa [#allocation11], 1 }
 0x35e   :  { %1038 = vsyncpa [#allocation5], 1 }
 0x35f   :  { %1040 = vsyncpa [#allocation5 + $0x1], 1 }
 0x360   :  { %1041 = vsyncpa [#allocation6], 1 }
 0x361   :  { %1043 = vsyncpa [#allocation6 + $0x1], 1 }

</bundles_post_ra>
